<compile_context>
chip_gen: v5e
topology: v5e:2x2
jax: 0.10.0
libtpu: 0.0.40
codegen_flags: <defaults>
</compile_context>

<pallas_src>
import jax
import jax.numpy as jnp
from jax.experimental import pallas as pl
from jax.experimental.pallas import tpu as pltpu

_LANES = 128
# ~2 MiB per input per pipeline buffer; x2 buffers x2 inputs = 8 MiB of VMEM,
# comfortably inside the default scoped-VMEM limit on v5e/v6e/v7x.
_TARGET_BLOCK_BYTES = 2 * 1024 * 1024


def _round_up(x, m):
    return ((x + m - 1) // m) * m


def _sublane_multiple(dtype):
    # Minimum second-to-last tile dim: (8,128) f32, (16,128) bf16, (32,128) int8/fp8.
    return max(8, 32 // jnp.dtype(dtype).itemsize)


def _make_mape_kernel(block_rows, ch_rows):
    """Kernel over one (block_rows, 128) tile of y_pred / y.

    Accumulates lane/sublane-dense partial sums directly into the resident
    (ch_rows, 128) output blocks (one per split of the leading grid axis).
    """
    k = block_rows // ch_rows

    def kernel(yp_ref, y_ref, num_ref, den_ref):
        @pl.when(pl.program_id(1) == 0)
        def _():
            num_ref[...] = jnp.zeros_like(num_ref)
            den_ref[...] = jnp.zeros_like(den_ref)

        yp = yp_ref[...].astype(jnp.float32)
        y = y_ref[...].astype(jnp.float32)

        num_t = jnp.abs(y - yp)
        # clip's lower bound (1e-6) is positive -> abs(clip(.)) == clip(.)
        den_t = jnp.clip(y, 1e-6, 1.0)

        if k > 1:
            # Reduce across stacked (ch_rows, 128) chunks: up to 4 independent
            # 8x128 accumulation chains (ch_rows up to 32) -> VALU ILP, no
            # per-step cross-lane XLU reduce.
            num_t = num_t.reshape(k, ch_rows, _LANES).sum(axis=0)
            den_t = den_t.reshape(k, ch_rows, _LANES).sum(axis=0)

        num_ref[...] += num_t
        den_ref[...] += den_t

    return kernel


def mape_loss(y_pred, y, *, block_rows_cap=None):
    assert y_pred.shape == y.shape, "y_pred and y must have the same shape"
    n = int(y.size)
    assert n > 0

    sub = max(_sublane_multiple(y_pred.dtype), _sublane_multiple(y.dtype))
    itemsize = max(jnp.dtype(y_pred.dtype).itemsize, jnp.dtype(y.dtype).itemsize)

    yp_flat = jnp.ravel(y_pred)
    y_flat = jnp.ravel(y)

    # (rows, 128) slab.  Only pad (and hence copy) when n is not a multiple of
    # 128 or the input is smaller than one minimal tile; otherwise the reshape
    # below is a free row-major bitcast.
    rows = max(pl.cdiv(n, _LANES), sub)
    pad = rows * _LANES - n
    if pad:
        # Zero padding: adds 0 to the numerator, 1e-6/elt to the denominator;
        # corrected analytically after the kernel (no in-kernel masking).
        yp_flat = jnp.pad(yp_flat, (0, pad))
        y_flat = jnp.pad(y_flat, (0, pad))
    yp2 = yp_flat.reshape(rows, _LANES)
    y2 = y_flat.reshape(rows, _LANES)

    # Block sizing: ~_TARGET_BLOCK_BYTES per input per buffer, dtype-aware
    # sublane rounding, never larger than the slab itself.
    max_block_rows = max(sub, (_TARGET_BLOCK_BYTES // (_LANES * itemsize)) // sub * sub)
    if block_rows_cap is not None:  # test hook to exercise multi-tile paths
        max_block_rows = max(sub, (block_rows_cap // sub) * sub)
    block_rows = min(max_block_rows, (rows // sub) * sub)

    # Grid covers only whole blocks; the ragged tail is summed with jnp below.
    full_blocks = rows // block_rows
    n_splits = 1
    kernel_blocks = full_blocks
    if full_blocks >= 2:
        # 2-way leading "parallel" axis (both TensorCores on v7x).  Push an odd
        # block into the tail so the grid stays uniform.
        n_splits = 2
        kernel_blocks = full_blocks - (full_blocks % 2)
    tiles_per_split = kernel_blocks // n_splits
    tail_row0 = kernel_blocks * block_rows
    tail_rows = rows - tail_row0

    # Accumulator rows: largest power-of-two multiple of 8 that divides
    # block_rows, capped at 32 (= 4 independent 8x128 chains).
    ch = 8
    while ch * 2 <= min(32, block_rows) and block_rows % (ch * 2) == 0:
        ch *= 2

    kernel = _make_mape_kernel(block_rows, ch)

    kernel_elems = kernel_blocks * block_rows * _LANES
    cost = pl.CostEstimate(
        flops=5 * kernel_elems,
        transcendentals=0,
        bytes_accessed=kernel_elems
        * (jnp.dtype(y_pred.dtype).itemsize + jnp.dtype(y.dtype).itemsize)
        + 2 * n_splits * ch * _LANES * 4,
    )

    in_spec = pl.BlockSpec(
        (block_rows, _LANES), lambda s, t: (s * tiles_per_split + t, 0)
    )
    # Lane/sublane-dense partial-sum outputs (no in-kernel scalar reduce, no
    # sub-128-lane masked store); reduced once with jnp.sum in the wrapper.
    out_spec = pl.BlockSpec((None, ch, _LANES), lambda s, t: (s, 0, 0))

    num_p, den_p = pl.pallas_call(
        kernel,
        out_shape=(
            jax.ShapeDtypeStruct((n_splits, ch, _LANES), jnp.float32),
            jax.ShapeDtypeStruct((n_splits, ch, _LANES), jnp.float32),
        ),
        grid_spec=pltpu.PrefetchScalarGridSpec(
            num_scalar_prefetch=0,
            grid=(n_splits, tiles_per_split),
            in_specs=[in_spec, in_spec],
            out_specs=[out_spec, out_spec],
        ),
        compiler_params=pltpu.CompilerParams(
            dimension_semantics=("parallel", "arbitrary"),
        ),
        cost_estimate=cost,
    )(yp2, y2)

    num_sum = jnp.sum(num_p)
    den_sum = jnp.sum(den_p)

    if tail_rows > 0:
        # Ragged tail (< one block): plain jnp, fused by XLA, tiny vs the bulk.
        yp_t = yp2[tail_row0:, :].astype(jnp.float32)
        y_t = y2[tail_row0:, :].astype(jnp.float32)
        num_sum = num_sum + jnp.sum(jnp.abs(y_t - yp_t))
        den_sum = den_sum + jnp.sum(jnp.clip(y_t, 1e-6, 1.0))

    if pad:
        # Remove the zero-padding's 1e-6-per-element denominator contribution.
        den_sum = den_sum - jnp.float32(pad) * jnp.float32(1e-6)

    return num_sum / den_sum


def _mape_ref(y_pred, y):
    yp = y_pred.astype(jnp.float32)
    yy = y.astype(jnp.float32)
    return jnp.mean(jnp.abs(yy - yp) / jnp.mean(jnp.abs(jnp.clip(yy, 1e-6, 1.0))))


def _check(y_pred, y, **kw):
    out = mape_loss(y_pred, y, **kw)
    jax.block_until_ready(out)
    ref = _mape_ref(y_pred, y)
    assert jnp.allclose(out, ref, rtol=1e-5, atol=1e-6), (out, ref, y.shape, kw)


if __name__ == "__main__":
    key = jax.random.PRNGKey(0)
    ks = jax.random.split(key, 10)

    # Primary case: typical 4-D inputs of the PyTorch module (2048 elems,
    # perfectly lane-aligned -> single block, no padding, no tail).
    shape = (2, 4, 16, 16)
    _check(jax.random.normal(ks[0], shape, jnp.float32),
           jax.random.normal(ks[1], shape, jnp.float32))

    # Tiny non-aligned case: exercises zero-pad + wrapper denominator fix.
    shape2 = (3, 5, 7)
    _check(jax.random.normal(ks[2], shape2, jnp.float32),
           jax.random.normal(ks[3], shape2, jnp.float32))

    # Lane-aligned but not block-aligned: exercises the jnp tail path (no pad).
    shape3 = (2, 10, 128)
    _check(jax.random.normal(ks[4], shape3, jnp.float32),
           jax.random.normal(ks[5], shape3, jnp.float32))

    # Small block cap: exercises multi-tile accumulation + 2-way parallel split.
    shape4 = (32, 256)
    _check(jax.random.normal(ks[6], shape4, jnp.float32),
           jax.random.normal(ks[7], shape4, jnp.float32), block_rows_cap=8)

    # Odd number of full blocks: split + odd block pushed into the tail.
    shape5 = (7, 8, 128)
    _check(jax.random.normal(ks[8], shape5, jnp.float32),
           jax.random.normal(ks[9], shape5, jnp.float32), block_rows_cap=16)

    print("KERNEL_OK")
</pallas_src>

<mosaic_0001>
module attributes {stable_mosaic.version = 11 : i64} {
  func.func @kernel(%arg0: i32, %arg1: i32, %arg2: memref<16x128xf32, #tpu.memory_space<vmem>>, %arg3: memref<16x128xf32, #tpu.memory_space<vmem>>, %arg4: memref<1x16x128xf32, #tpu.memory_space<vmem>>, %arg5: memref<1x16x128xf32, #tpu.memory_space<vmem>>) attributes {dimension_semantics = [#tpu.dimension_semantics<parallel>, #tpu.dimension_semantics<arbitrary>], iteration_bounds = array<i64: 1, 1>, scalar_prefetch = 0 : i64, scratch_operands = 0 : i64, tpu.core_type = #tpu.core_type<tc>, window_params = [{transform_indices = @transform_0, window_bounds = array<i64: 16, 128>}, {transform_indices = @transform_1, window_bounds = array<i64: 16, 128>}, {transform_indices = @transform_2, window_bounds = array<i64: 1, 16, 128>}, {transform_indices = @transform_3, window_bounds = array<i64: 1, 16, 128>}]} {
    %c0_i32 = arith.constant 0 : i32
    %0 = arith.cmpi eq, %arg1, %c0_i32 : i32
    %1 = arith.extui %0 : i1 to i32
    %c0_i32_0 = arith.constant 0 : i32
    %2 = arith.cmpi ne, %1, %c0_i32_0 : i32
    scf.if %2 {
      %cst_17 = arith.constant 0.000000e+00 : f32
      %23 = vector.broadcast %cst_17 : f32 to vector<16x128xf32>
      %c0_18 = arith.constant 0 : index
      %c0_19 = arith.constant 0 : index
      %c0_20 = arith.constant 0 : index
      %24 = vector.load %arg4[%c0_18, %c0_19, %c0_20] : memref<1x16x128xf32, #tpu.memory_space<vmem>>, vector<1x16x128xf32>
      %25 = vector.shape_cast %24 : vector<1x16x128xf32> to vector<16x128xf32>
      %26 = vector.shape_cast %23 : vector<16x128xf32> to vector<1x16x128xf32>
      tpu.vector_store %arg4[%c0_18, %c0_19, %c0_20], %26 {strides = array<i32>} : memref<1x16x128xf32, #tpu.memory_space<vmem>>, vector<1x16x128xf32>,
      %cst_21 = arith.constant 0.000000e+00 : f32
      %27 = vector.broadcast %cst_21 : f32 to vector<16x128xf32>
      %c0_22 = arith.constant 0 : index
      %c0_23 = arith.constant 0 : index
      %c0_24 = arith.constant 0 : index
      %28 = vector.load %arg5[%c0_22, %c0_23, %c0_24] : memref<1x16x128xf32, #tpu.memory_space<vmem>>, vector<1x16x128xf32>
      %29 = vector.shape_cast %28 : vector<1x16x128xf32> to vector<16x128xf32>
      %30 = vector.shape_cast %27 : vector<16x128xf32> to vector<1x16x128xf32>
      tpu.vector_store %arg5[%c0_22, %c0_23, %c0_24], %30 {strides = array<i32>} : memref<1x16x128xf32, #tpu.memory_space<vmem>>, vector<1x16x128xf32>,
    } else {
    }
    %c0 = arith.constant 0 : index
    %c0_1 = arith.constant 0 : index
    %3 = vector.load %arg2[%c0, %c0_1] : memref<16x128xf32, #tpu.memory_space<vmem>>, vector<16x128xf32>
    %c0_2 = arith.constant 0 : index
    %c0_3 = arith.constant 0 : index
    %4 = vector.load %arg3[%c0_2, %c0_3] : memref<16x128xf32, #tpu.memory_space<vmem>>, vector<16x128xf32>
    %5 = arith.subf %4, %3 : vector<16x128xf32>
    %6 = math.absf %5 : vector<16x128xf32>
    %cst = arith.constant 9.99999997E-7 : f32
    %cst_4 = arith.constant 1.000000e+00 : f32
    %7 = vector.broadcast %cst : f32 to vector<16x128xf32>
    %8 = arith.maximumf %7, %4 : vector<16x128xf32>
    %9 = vector.broadcast %cst_4 : f32 to vector<16x128xf32>
    %10 = arith.minimumf %9, %8 : vector<16x128xf32>
    %c0_5 = arith.constant 0 : index
    %c0_6 = arith.constant 0 : index
    %c0_7 = arith.constant 0 : index
    %11 = vector.load %arg4[%c0_5, %c0_6, %c0_7] : memref<1x16x128xf32, #tpu.memory_space<vmem>>, vector<1x16x128xf32>
    %12 = vector.shape_cast %11 : vector<1x16x128xf32> to vector<16x128xf32>
    %13 = arith.addf %12, %6 : vector<16x128xf32>
    %c0_8 = arith.constant 0 : index
    %c0_9 = arith.constant 0 : index
    %c0_10 = arith.constant 0 : index
    %14 = vector.load %arg4[%c0_8, %c0_9, %c0_10] : memref<1x16x128xf32, #tpu.memory_space<vmem>>, vector<1x16x128xf32>
    %15 = vector.shape_cast %14 : vector<1x16x128xf32> to vector<16x128xf32>
    %16 = vector.shape_cast %13 : vector<16x128xf32> to vector<1x16x128xf32>
    tpu.vector_store %arg4[%c0_8, %c0_9, %c0_10], %16 {strides = array<i32>} : memref<1x16x128xf32, #tpu.memory_space<vmem>>, vector<1x16x128xf32>,
    %c0_11 = arith.constant 0 : index
    %c0_12 = arith.constant 0 : index
    %c0_13 = arith.constant 0 : index
    %17 = vector.load %arg5[%c0_11, %c0_12, %c0_13] : memref<1x16x128xf32, #tpu.memory_space<vmem>>, vector<1x16x128xf32>
    %18 = vector.shape_cast %17 : vector<1x16x128xf32> to vector<16x128xf32>
    %19 = arith.addf %18, %10 : vector<16x128xf32>
    %c0_14 = arith.constant 0 : index
    %c0_15 = arith.constant 0 : index
    %c0_16 = arith.constant 0 : index
    %20 = vector.load %arg5[%c0_14, %c0_15, %c0_16] : memref<1x16x128xf32, #tpu.memory_space<vmem>>, vector<1x16x128xf32>
    %21 = vector.shape_cast %20 : vector<1x16x128xf32> to vector<16x128xf32>
    %22 = vector.shape_cast %19 : vector<16x128xf32> to vector<1x16x128xf32>
    tpu.vector_store %arg5[%c0_14, %c0_15, %c0_16], %22 {strides = array<i32>} : memref<1x16x128xf32, #tpu.memory_space<vmem>>, vector<1x16x128xf32>,
    return
  }
  func.func @transform_0(%arg0: i32, %arg1: i32) -> (i32, i32) {
    %c1_i32 = arith.constant 1 : i32
    %0 = arith.muli %arg0, %c1_i32 : i32
    %1 = arith.addi %0, %arg1 : i32
    %c0_i32 = arith.constant 0 : i32
    %c0_i32_0 = arith.constant 0 : i32
    return %1, %c0_i32 : i32, i32
  }
  func.func @transform_1(%arg0: i32, %arg1: i32) -> (i32, i32) {
    %c1_i32 = arith.constant 1 : i32
    %0 = arith.muli %arg0, %c1_i32 : i32
    %1 = arith.addi %0, %arg1 : i32
    %c0_i32 = arith.constant 0 : i32
    %c0_i32_0 = arith.constant 0 : i32
    return %1, %c0_i32 : i32, i32
  }
  func.func @transform_2(%arg0: i32, %arg1: i32) -> (i32, i32, i32) {
    %c0_i32 = arith.constant 0 : i32
    %c0_i32_0 = arith.constant 0 : i32
    %c0_i32_1 = arith.constant 0 : i32
    return %arg0, %c0_i32, %c0_i32_0 : i32, i32, i32
  }
  func.func @transform_3(%arg0: i32, %arg1: i32) -> (i32, i32, i32) {
    %c0_i32 = arith.constant 0 : i32
    %c0_i32_0 = arith.constant 0 : i32
    %c0_i32_1 = arith.constant 0 : i32
    return %arg0, %c0_i32, %c0_i32_0 : i32, i32, i32
  }
}

</mosaic_0001>

<bundles_post_ra>
// kernel: tpu_custom_call.1
= control target key start
LH: loop header
LB: loop body
LE: loop exit
PB: predicated region body
PF: predicated region fallthrough
CT: control target
= control target key end

     0   :  { %9 = vsyncpa [#allocation3], 0  ;;  %s290_s0 = inlined_call_operand.hbm [shape: f32[16,128], index: 0, kind: input, shape index: {}]   ;;  %s291_s1 = inlined_call_operand.hbm [shape: f32[16,128], index: 1, kind: input, shape index: {}]   ;;  %s292_s2 = inlined_call_operand.hbm [shape: f32[1,16,128], index: 2, kind: output, shape index: {0}]   ;;  %s293_s3 = inlined_call_operand.hbm [shape: f32[1,16,128], index: 3, kind: output, shape index: {1}]  }
   0x1   :  { %10 = vsyncpa [#allocation6], 0 }
   0x2   :  { %11 = vsyncpa [#allocation4], 0 }
   0x3   :  { %12 = vsyncpa [#allocation9], 0  ;;  %s21_s14 = sshll.u32 %s290_s0, 4  ;;  %s240_s15 = smov [#allocation2]   ;;  %s22_s14 = int_to_ptr.hbm [resolvable:$true] %s21_s14 }
   0x4   :  { %s23_s16 = sshll.u32 %s240_s15, 4  ;;  %s38_s19 = sshll.u32 %s291_s1, 4  ;;  %s24_s16 = int_to_ptr.vmem [resolvable:$true] %s23_s16  ;;  %s39_s19 = int_to_ptr.hbm [resolvable:$true] %s38_s19 }
   0x5   :  { %s241_s20 = smov 128   ;;  %s242_s21 = smov 8  }
   0x6   :  { %29 = dma.hbm_to_vmem [thread:$0]  %s22_s14, 256, %s24_s16, [#allocation3], %s241_s20, %s241_s20, %s242_s21  }
   0x7   :  { %s243_s22 = smov [#allocation5]  }
   0x8   :  { %s40_s23 = sshll.u32 %s243_s22, 4  ;;  %s41_s23 = int_to_ptr.vmem [resolvable:$true] %s40_s23 }
   0x9   :  { %46 = dma.hbm_to_vmem [thread:$0]  %s39_s19, 256, %s41_s23, [#allocation6], %s241_s20, %s241_s20, %s242_s21  }
   0xa   :  { %232 = dma.done.wait [#allocation3], 256  }
   0xb   :  { %233 = vsyncadd [#allocation3], 4294967040 }
   0xc   :  { %234 = dma.done.wait [#allocation6], 256  }
   0xd   :  { %235 = vsyncadd [#allocation6], 4294967040  ;;  %v67_v0 = vld [vmem:[#allocation2] sm:$0xff]  ;;  %v69_v1 = vld [vmem:[#allocation5] sm:$0xff]  ;;  %s244_s0 = smov [#allocation7]   ;;  %s97_s26 = sshll.u32 %s292_s2, 4  ;;  %s98_s26 = int_to_ptr.hbm [resolvable:$true] %s97_s26 }
   0xe   :  { %v68_v2 = vld [vmem:[#allocation2 + $0x8] sm:$0xff]  ;;  %v71_v3 = vsub.f32 %v69_v1, %v67_v0  ;;  %v70_v4 = vld [vmem:[#allocation5 + $0x8] sm:$0xff]  ;;  %v75_v5 = vmax.f32 %v69_v1, 1e-06  ;;  %s95_s1 = sshll.u32 %s244_s0, 4  ;;  %s245_s27 = smov [#allocation8]   ;;  %s96_s1 = int_to_ptr.vmem [resolvable:$true] %s95_s1 }
   0xf   :  { %v72_v6 = vsub.f32 %v70_v4, %v68_v2  ;;  %v76_v7 = vmax.f32 %v70_v4, 1e-06  ;;  %s108_s28 = sshll.u32 %s245_s27, 4  ;;  %s110_s4 = sshll.u32 %s293_s3, 4  ;;  %s109_s28 = int_to_ptr.vmem [resolvable:$true] %s108_s28  ;;  %s111_s4 = int_to_ptr.hbm [resolvable:$true] %s110_s4 }
  0x10   :  { %v73_v8 = vand.u32 2147483647, %v71_v3  ;;  %v77_v9 = vmin.f32 %v75_v5, 1.0 }
  0x11   :  { %v74_v10 = vand.u32 2147483647, %v72_v6  ;;  %v78_v11 = vmin.f32 %v76_v7, 1.0 }
  0x12   :  { %83 = vst [vmem:[#allocation7] sm:$0xff] %v73_v8 }
  0x13   :  { %84 = vst [vmem:[#allocation7 + $0x8] sm:$0xff] %v74_v10 }
  0x14   :  { %89 = vst [vmem:[#allocation8] sm:$0xff] %v77_v9  ;;  %103 = dma.vmem_to_hbm [thread:$0]  %s96_s1, 256, %s98_s26, [#allocation4], %s241_s20, %s241_s20, %s242_s21  }
  0x15   :  { %90 = vst [vmem:[#allocation8 + $0x8] sm:$0xff] %v78_v11 }
  0x16   :  { %116 = dma.vmem_to_hbm [thread:$0]  %s109_s28, 256, %s111_s4, [#allocation9], %s241_s20, %s241_s20, %s242_s21  }
  0x17   :  { %236 = dma.done.wait [#allocation4], 256  }
  0x18   :  { %237 = vsyncadd [#allocation4], 4294967040 }
  0x19   :  { %238 = dma.done.wait [#allocation9], 256  }
  0x1a   :  { %239 = vsyncadd [#allocation9], 4294967040 }
  0x1b   :  { %125 = vsyncpa [#allocation3], 1 }
  0x1c   :  { %126 = vsyncpa [#allocation6], 1 }
  0x1d   :  { %127 = vsyncpa [#allocation4], 1 }
  0x1e   :  { %128 = vsyncpa [#allocation9], 1 }

</bundles_post_ra>
